<compile_context>
chip_gen: v7x
topology: tpu7x:2x2x1
jax: 0.10.0
libtpu: 0.0.40
codegen_flags: <defaults>
</compile_context>

<pallas_src>
import functools
import math

import jax
import jax.numpy as jnp
from jax.experimental import pallas as pl
from jax.experimental.pallas import tpu as pltpu

LANES = 128
SUBLANES = 8


def make_positional_encoding(d_model: int, max_len: int = 5000) -> jnp.ndarray:
    """Deterministic pe buffer, identical to the PyTorch __init__ (f32, (1, max_len, D))."""
    position = jnp.arange(0, max_len, dtype=jnp.float32)[:, None]              # (max_len, 1)
    div_term = jnp.exp(
        jnp.arange(0, d_model, 2, dtype=jnp.float32) * (-(math.log(10000.0) / d_model))
    )                                                                           # (d_model/2,)
    angles = position * div_term                                                # (max_len, d_model/2)
    pe = jnp.zeros((max_len, d_model), dtype=jnp.float32)
    pe = pe.at[:, 0::2].set(jnp.sin(angles))
    pe = pe.at[:, 1::2].set(jnp.cos(angles))
    return pe[None, :, :]                                                       # (1, max_len, d_model)


def _pe_add_kernel(x_ref, pe_ref, o_ref):
    # Upcast both operands to f32 so bf16 activations follow the same
    # promoted-add semantics as the PyTorch module (no-op casts for f32).
    x = x_ref[...].astype(jnp.float32)
    p = pe_ref[...].astype(jnp.float32)
    o_ref[...] = (x + p).astype(o_ref.dtype)      # broadcasting handles (Bt,tS,D)+(1,tS,D)


def _round_up(n: int, m: int) -> int:
    return ((n + m - 1) // m) * m


def _sublane_tile(itemsize: int) -> int:
    # Native packed sublane tile: 8 for f32, 16 for bf16, 32 for int8/fp8.
    return max(SUBLANES, 32 // max(itemsize, 1))


@functools.lru_cache(maxsize=None)
def _chip_budget() -> tuple[int, int]:
    """(max_tile_bytes, vmem_limit_bytes) sized per TPU generation."""
    vmem_phys = 128 * 1024 * 1024
    try:
        vmem_phys = int(pltpu.get_tpu_info().vmem_capacity_bytes)
    except Exception:
        pass
    if vmem_phys <= 64 * 1024 * 1024:
        # v7x-class: only 64 MiB VMEM but ~3.2 TB/s HBM, so per-step overhead is
        # proportionally larger -> bigger tiles.  3 arrays x 2 buffers x 8 MiB = 48 MiB.
        max_tile = 8 * 1024 * 1024
        vmem_limit = max(32 * 1024 * 1024,
                         min(vmem_phys - 8 * 1024 * 1024, 56 * 1024 * 1024))
    else:
        # v5e/v6e: 4 MiB tiles already sit near the HBM roofline; the limit raise
        # matters on v5e whose default scoped VMEM (16 MiB) is below the 24 MiB
        # working set.
        max_tile = 4 * 1024 * 1024
        vmem_limit = 48 * 1024 * 1024
    return max_tile, vmem_limit


def _pick_row_tile(num_rows: int, row_bytes: int, sub: int, max_tile_bytes: int) -> int:
    """Row count per block: multiple of the packed sublane tile, <= byte budget."""
    cap = max(1, max_tile_bytes // max(row_bytes, 1))
    cap = max(sub, (cap // sub) * sub)
    return min(cap, _round_up(num_rows, sub))


def _cost_estimate(B: int, S: int, D: int, itemsize: int) -> pl.CostEstimate:
    # read x, read pe once (batch-inner grid skips redundant pe DMAs), write out
    return pl.CostEstimate(
        flops=B * S * D,
        transcendentals=0,
        bytes_accessed=(2 * B + 1) * S * D * itemsize,
    )


def positional_encoding_forward(x: jnp.ndarray,
                                pe_full: jnp.ndarray,
                                pe_flat: jnp.ndarray | None = None,
                                *,
                                donate_x: bool = False) -> jnp.ndarray:
    """x: (B, S, D). pe_full: (1, max_len, D) in x.dtype. pe_flat: optional
    lane-dense (1, ceil(max_len*D/128), 128) view of pe_full. Returns x + pe[:, :S]."""
    B, S, D = x.shape
    assert S <= pe_full.shape[1], f"seq_len {S} exceeds max_len {pe_full.shape[1]}"
    assert D == pe_full.shape[2], f"d_model mismatch: x has {D}, pe has {pe_full.shape[2]}"

    itemsize = jnp.dtype(x.dtype).itemsize
    sub = _sublane_tile(itemsize)
    max_tile_bytes, vmem_limit = _chip_budget()
    cost = _cost_estimate(B, S, D, itemsize)
    io_alias = {0: 0} if donate_x else {}

    if (S * D) % LANES == 0:
        # Lane-dense path: flatten (S, D) into rows of exactly 128 lanes so every
        # vector store is unmasked, even when D < 128.
        R = (S * D) // LANES
        if pe_flat is None:  # standalone use without the cached slab
            pe_flat = pe_full[:, :S, :].reshape(1, R, LANES)
        x_r = x.reshape(B, R, LANES)

        tR = _pick_row_tile(R, LANES * itemsize, sub, max_tile_bytes)
        n_r = pl.cdiv(R, tR)
        # Batch axis sequential ("arbitrary") when the row axis can feed both cores:
        # guarantees the pe-DMA-skip and avoids duplicating pe traffic across TCs.
        dims = ("parallel", "arbitrary") if n_r >= 2 else ("parallel", "parallel")
        cparams = pltpu.CompilerParams(dimension_semantics=dims,
                                       vmem_limit_bytes=vmem_limit)

        out = pl.pallas_call(
            _pe_add_kernel,
            out_shape=jax.ShapeDtypeStruct((B, R, LANES), x.dtype),
            grid_spec=pltpu.PrefetchScalarGridSpec(
                num_scalar_prefetch=0,
                # row-tile axis outer, batch inner: pe block index is constant across
                # consecutive batch steps -> pe DMA issued once per row tile.
                grid=(n_r, B),
                in_specs=[
                    pl.BlockSpec((1, tR, LANES), lambda r, b: (b, r, 0)),   # x
                    pl.BlockSpec((1, tR, LANES), lambda r, b: (0, r, 0)),   # pe (batch-broadcast)
                ],
                out_specs=pl.BlockSpec((1, tR, LANES), lambda r, b: (b, r, 0)),
            ),
            compiler_params=cparams,
            cost_estimate=cost,
            input_output_aliases=io_alias,
        )(x_r, pe_flat)
        return out.reshape(B, S, D)

    # Fallback (S*D not a multiple of 128): keep (B, S, D) layout, full D per block,
    # and pack several batch elements per block so small-D blocks are not tiny.
    row_bytes = D * itemsize
    tS = _pick_row_tile(S, row_bytes, sub, max_tile_bytes)
    bt = max(1, min(B, max_tile_bytes // max(tS * row_bytes, 1)))
    n_s = pl.cdiv(S, tS)
    n_b = pl.cdiv(B, bt)
    dims = ("parallel", "arbitrary") if n_s >= 2 else ("parallel", "parallel")
    cparams = pltpu.CompilerParams(dimension_semantics=dims,
                                   vmem_limit_bytes=vmem_limit)

    return pl.pallas_call(
        _pe_add_kernel,
        out_shape=jax.ShapeDtypeStruct((B, S, D), x.dtype),
        grid_spec=pltpu.PrefetchScalarGridSpec(
            num_scalar_prefetch=0,
            grid=(n_s, n_b),
            in_specs=[
                pl.BlockSpec((bt, tS, D), lambda s, b: (b, s, 0)),          # x (multi-batch block)
                pl.BlockSpec((1, tS, D), lambda s, b: (0, s, 0)),           # pe (batch-broadcast)
            ],
            out_specs=pl.BlockSpec((bt, tS, D), lambda s, b: (b, s, 0)),
        ),
        compiler_params=cparams,
        cost_estimate=cost,
        input_output_aliases=io_alias,
    )(x, pe_full)


class PositionalEncoding:
    """Pallas-backed equivalent of the PyTorch PositionalEncoding module."""

    def __init__(self, d_model: int, max_len: int = 5000):
        self.d_model = d_model
        self.max_len = max_len
        self.pe = make_positional_encoding(d_model, max_len)   # f32 "register_buffer"
        self._pe_cache: dict[str, tuple[jnp.ndarray, jnp.ndarray]] = {}

    def _cached_pe(self, dtype) -> tuple[jnp.ndarray, jnp.ndarray]:
        """pe in the activation dtype + lane-dense padded slab, built once per dtype."""
        key = jnp.dtype(dtype).name
        hit = self._pe_cache.get(key)
        if hit is None:
            pe_c = self.pe.astype(dtype)                                   # (1, max_len, D)
            flat = pe_c.reshape(-1)
            pad = (-int(flat.shape[0])) % LANES
            if pad:
                flat = jnp.concatenate([flat, jnp.zeros((pad,), dtype=dtype)])
            pe_flat = flat.reshape(1, -1, LANES)                           # (1, ceil(max_len*D/128), 128)
            hit = (pe_c, pe_flat)
            self._pe_cache[key] = hit
        return hit

    def __call__(self, x: jnp.ndarray, *, donate_x: bool = False) -> jnp.ndarray:
        pe_full, pe_flat = self._cached_pe(x.dtype)
        return positional_encoding_forward(x, pe_full, pe_flat, donate_x=donate_x)


if __name__ == "__main__":
    max_len = 5000

    # Main (lane-dense) path: S*D is a multiple of 128.
    B, S, D = 2, 32, 32
    module = PositionalEncoding(D, max_len)
    x = jax.random.normal(jax.random.PRNGKey(0), (B, S, D), dtype=jnp.float32)
    ref = x + module.pe[:, :S, :]
    out = jax.block_until_ready(module(x))
    assert out.shape == (B, S, D)
    assert jnp.allclose(out, ref, atol=1e-6), "lane-dense path mismatch vs reference"

    # Fallback path: S*D not a multiple of 128 (small D), multi-batch blocks.
    B2, S2, D2 = 2, 8, 20
    module2 = PositionalEncoding(D2, max_len)
    x2 = jax.random.normal(jax.random.PRNGKey(0), (B2, S2, D2), dtype=jnp.float32)
    ref2 = x2 + module2.pe[:, :S2, :]
    out2 = jax.block_until_ready(module2(x2))
    assert out2.shape == (B2, S2, D2)
    assert jnp.allclose(out2, ref2, atol=1e-6), "fallback path mismatch vs reference"

    print("KERNEL_OK")
</pallas_src>

<mosaic_0001>
module attributes {stable_mosaic.version = 11 : i64} {
  func.func @_pe_add_kernel(%arg0: i32, %arg1: i32, %arg2: memref<1x8x128xf32, #tpu.memory_space<vmem>>, %arg3: memref<1x8x128xf32, #tpu.memory_space<vmem>>, %arg4: memref<1x8x128xf32, #tpu.memory_space<vmem>>) attributes {dimension_semantics = [#tpu.dimension_semantics<parallel>, #tpu.dimension_semantics<parallel>], iteration_bounds = array<i64: 1, 2>, scalar_prefetch = 0 : i64, scratch_operands = 0 : i64, tpu.core_type = #tpu.core_type<tc>, window_params = [{transform_indices = @transform_0, window_bounds = array<i64: 1, 8, 128>}, {transform_indices = @transform_1, window_bounds = array<i64: 1, 8, 128>}, {transform_indices = @transform_2, window_bounds = array<i64: 1, 8, 128>}]} {
    %c0 = arith.constant 0 : index
    %c0_0 = arith.constant 0 : index
    %c0_1 = arith.constant 0 : index
    %0 = vector.load %arg2[%c0, %c0_0, %c0_1] : memref<1x8x128xf32, #tpu.memory_space<vmem>>, vector<1x8x128xf32>
    %c0_2 = arith.constant 0 : index
    %c0_3 = arith.constant 0 : index
    %c0_4 = arith.constant 0 : index
    %1 = vector.load %arg3[%c0_2, %c0_3, %c0_4] : memref<1x8x128xf32, #tpu.memory_space<vmem>>, vector<1x8x128xf32>
    %2 = arith.addf %0, %1 : vector<1x8x128xf32>
    %c0_5 = arith.constant 0 : index
    %c0_6 = arith.constant 0 : index
    %c0_7 = arith.constant 0 : index
    %3 = vector.load %arg4[%c0_5, %c0_6, %c0_7] : memref<1x8x128xf32, #tpu.memory_space<vmem>>, vector<1x8x128xf32>
    tpu.vector_store %arg4[%c0_5, %c0_6, %c0_7], %2 {strides = array<i32>} : memref<1x8x128xf32, #tpu.memory_space<vmem>>, vector<1x8x128xf32>,
    return
  }
  func.func @transform_0(%arg0: i32, %arg1: i32) -> (i32, i32, i32) {
    %c0_i32 = arith.constant 0 : i32
    %c0_i32_0 = arith.constant 0 : i32
    return %arg1, %arg0, %c0_i32 : i32, i32, i32
  }
  func.func @transform_1(%arg0: i32, %arg1: i32) -> (i32, i32, i32) {
    %c0_i32 = arith.constant 0 : i32
    %c0_i32_0 = arith.constant 0 : i32
    %c0_i32_1 = arith.constant 0 : i32
    return %c0_i32, %arg0, %c0_i32_0 : i32, i32, i32
  }
  func.func @transform_2(%arg0: i32, %arg1: i32) -> (i32, i32, i32) {
    %c0_i32 = arith.constant 0 : i32
    %c0_i32_0 = arith.constant 0 : i32
    return %arg1, %arg0, %c0_i32 : i32, i32, i32
  }
}

</mosaic_0001>

<bundles_post_ra>
// kernel: tpu_custom_call.1
= control target key start
LH: loop header
LB: loop body
LE: loop exit
PB: predicated region body
PF: predicated region fallthrough
CT: control target
= control target key end

     0   :  { %7 = vsyncpa [#allocation3], 0  ;;  %s564_s0 = inlined_call_operand.vmem [shape: f32[2,8,128], index: 0, kind: input, shape index: {}]   ;;  %s565_s1 = inlined_call_operand.vmem [shape: f32[1,1250,128], index: 1, kind: input, shape index: {}]   ;;  %s566_s2 = inlined_call_operand.hbm [shape: f32[2,8,128], index: 2, kind: output, shape index: {}]  }
   0x1   :  { %9 = vsyncpa [#allocation3 + $0x1], 0  ;;  %s449_s9 = smov 0   ;;  %s451_s10 = smov 0  }
   0x2   :  { %s453_s11 = smov 0   ;;  %s455_s12 = smov 0  }
   0x3   :  { %s457_s13 = smov 0   ;;  %s459_s14 = smov 0  }
   0x4 LB: > { %s286_s15 = sadd.s32 4294967295, %s431_s14   ;;  %s287_s16 = sadd.s32 4294967294, %s431_s14   ;;  %s431_s14 = sphi %s459_s14, %s15_s14   ;;  %s427_s13 = sphi %s457_s13, %s573_s13   ;;  %s423_s12 = sphi %s455_s12, %s572_s12   ;;  %s419_s11 = sphi %s453_s11, %s571_s11   ;;  %s415_s10 = sphi %s451_s10, %s570_s10   ;;  %s411_s9 = sphi %s449_s9, %s569_s9  }
   0x5   : > { %s24_s17 = sadd.s32 1, %s427_s13  ;;  %s90_s18 = sadd.s32 1, %s419_s11 }
   0x6   : > { %p25_p0 = scmp.ge.s32.totalorder %s24_s17, 2  ;;  %p100_p1 = scmp.ne.s32.totalorder %s419_s11, %s415_s10 }
   0x7   : > { %p101_p2 = scmp.eq.s32.totalorder %s286_s15, 1  ;;  %p106_p3 = scmp.ne.s32.totalorder %s415_s10, %s411_s9 }
   0x8   : > { %s575_s17 = smov (%p25_p0, %s24_s17), 0  ;;  %p107_p5 = scmp.eq.s32.totalorder %s287_s16, 1 }
   0x9   : > { %p489_p4 = por %p101_p2, %p100_p1  ;;  %s85_s20 = ssub.s32 %s427_s13, %s575_s17 }
   0xa   : > { %p291_p6 = scmp.ge.s32.totalorder %s431_s14, 1  ;;  %p88_p7 = scmp.eq.s32.totalorder %s85_s20, 0 }
   0xb   : > { %p496_p8 = por %p107_p5, %p106_p3  ;;  %p142_p9 = scmp.lt.s32.totalorder %s431_s14, 3 }
   0xc   : > { %s502_s22 = scalar_select %p88_p7, %s419_s11, %s90_s18  }
   0xd   : > { %p143_p10 = pnand %p291_p6, %p142_p9 }
   0xe   : > { %s167_s23 = sand.u32 (!%p143_p10), 1, %s415_s10   ;;  %p170_p11 = scmp.lt.s32.totalorder (!%p143_p10), %s423_s12, 1  ;;  %v182_v0 = vld [vmem:[%s565_s1] sm:$0xff] (!%p143_p10) }
   0xf   : > { %146 = sbr.rel (%p143_p10) target bundleno = 43 (0x2b), region = 28  ;;  %s292_s24 = sshll.u32 (!%p143_p10), %s167_s23, 3 }
  0x10   : > { %s295_s26 = sshll.u32 (!%p143_p10), %s423_s12, 7  ;;  %s169_s30 = scalar_lea.vmem (!%p143_p10), [#allocation2], %s292_s24 }
  0x11   : > { %s200_s3 = sshll.u32 (!%p143_p10), %s169_s30, 4  ;;  %s186_s15 = scalar_lea.sflag (!%p143_p10), [#allocation3], %s167_s23  ;;  %s514_s3 = int_to_ptr.vmem [resolvable:$true] %s200_s3 }
  0x12   : > { %s353_s16 = scalar_lea.vmem (!%p143_p10), %s514_s3, 128  ;;  %s433_s18 = smov (!%p143_p10), [#allocation2]  }
  0x13   : > { %p354_p12 = scmp.ne.s32.totalorder (!%p143_p10), %s514_s3, %s353_s16  ;;  %s357_s20 = sshll.u32 (!%p143_p10), %s433_s18, 4  ;;  %s358_s20 = int_to_ptr.vmem [resolvable:$false] %s357_s20 }
  0x14   : > { %s359_s24 = scalar_lea.vmem (!%p143_p10), %s358_s20, 256  ;;  %p360_p1 = scmp.lt.s32.totalorder (!%p143_p10), %s514_s3, %s358_s20 }
  0x15   : > { %p355_p13 = pnand (!%p143_p10), %p354_p12, %p489_p4  ;;  %p361_p2 = scmp.lt.s32.totalorder (!%p143_p10), %s359_s24, %s353_s16 }
  0x16   : > { %s171_s25 = scalar_select %p170_p11, %s423_s12, 1 }
  0x17   : > { %s519_s12 = scalar_lea.hbm %s566_s2, %s295_s26  ;;  %p356_p0 = pneg %p355_p13 }
  0x18   : > { %s293_s27 = sshll.u32 %s171_s25, 3  ;;  %p362_p3 = por %p361_p2, %p360_p1 }
  0x19   : > { %s176_s6 = scalar_lea.vmem %s564_s0, %s293_s27 }
  0x1a   : > { %v181_v1 = vld [vmem:[%s176_s6] sm:$0xff]  ;;  %p363_p5 = pnand %p362_p3, %p356_p0 }
  0x1b   : > { %v183_v2 = vadd.f32 %v182_v0, %v181_v1 }
  0x1d   : > { %184 = vst [vmem:[%s169_s30] sm:$0xff] %v183_v2 }
  0x1e   : > { %366 = shalt.err (!%p363_p5)
}
  0x1f   : > { %s367_s23 = scalar_lea.hbm %s519_s12, 128  ;;  %s371_s27 = scalar_lea.hbm %s566_s2, 256 }
  0x20   : > { %p368_p6 = scmp.ne.s32.totalorder %s519_s12, %s367_s23  ;;  %p372_p10 = scmp.lt.u32.totalorder %s519_s12, %s566_s2 }
  0x21   : > { %p373_p11 = scmp.lt.u32.totalorder %s371_s27, %s367_s23  ;;  %p375_p13 = scmp.lt.u32.totalorder %s367_s23, %s519_s12 }
  0x22   : > { %p369_p7 = pnand %p368_p6, %p489_p4 }
  0x23   : > { %p374_p12 = por %p373_p11, %p372_p10 }
  0x24   : > { %p370_p9 = pneg %p369_p7 }
  0x25   : > { %p376_p0 = por %p375_p13, %p374_p12 }
  0x27   : > { %p377_p1 = pnand %p376_p0, %p370_p9 }
  0x29   : > { %380 = shalt.err (!%p377_p1)
}
  0x2a   : > { %298 = dma.vmem_to_hbm [thread:$0]  (%p489_p4), %s514_s3, 128, %s519_s12, %s186_s15  }
  0x2b PF: > { %p304_p2 = scmp.ge.s32.totalorder %s431_s14, 2  ;;  %s212_s30 = sand.u32 1, %s411_s9  }
  0x2c   : > { %s213_s4 = scalar_lea.sflag [#allocation3], %s212_s30 }
  0x2d   : > { %p301_p3 = pnand %p304_p2, %p496_p8 }
  0x2f   : > { %406 = dma.done.wait (!%p301_p3), %s213_s4, 128  }
  0x30   : > { %408 = vsyncadd (!%p301_p3), %s213_s4, 4294967168  ;;  %s15_s14 = sadd.s32 1, %s431_s14   ;;  %s569_s9 = smov %s415_s10 }
  0x31   : > { %p12_p5 = scmp.ge.s32.totalorder %s15_s14, 4   ;;  %s570_s10 = smov %s419_s11 }
  0x32   : > { %s571_s11 = smov %s502_s22  ;;  %s572_s12 = smov %s427_s13 }
  0x33   : > { %s573_s13 = smov %s575_s17  ;;  %14 = sbr.rel (!%p12_p5) target bundleno = 4 (0x4), region = 66 }
  0x3a   :  { %218 = vsyncpa [#allocation3], 1 }
  0x3b   :  { %220 = vsyncpa [#allocation3 + $0x1], 1 }

</bundles_post_ra>
